<compile_context>
chip_gen: v7x
topology: tpu7x:2x2x1
jax: 0.10.0
libtpu: 0.0.40
codegen_flags: <defaults>
</compile_context>

<pallas_src>
import functools
import math

import jax
import jax.numpy as jnp
from jax.experimental import pallas as pl
from jax.experimental.pallas import tpu as pltpu


# ----------------------------------------------------------------------------
# helpers
# ----------------------------------------------------------------------------

_TM, _TN, _TK = 128, 128, 512      # 128 tiles: >=2 parallel steps, v5e-friendly
_TKV = 512                         # KV tile for flash-style attention


def _round_up(v, m):
    return ((v + m - 1) // m) * m


def _pick(dim, tile, align):
    """Return (padded_dim, block_size) for one matmul axis."""
    if dim <= tile:
        p = _round_up(dim, align)
        return p, p
    return _round_up(dim, tile), tile


def _to_bf16(x):
    return x if x.dtype == jnp.bfloat16 else x.astype(jnp.bfloat16)


# ----------------------------------------------------------------------------
# Matmul (+ optional fused LayerNorm / SiLU on input, SiLU on output)
# ----------------------------------------------------------------------------

def _matmul_direct_kernel(*refs, act_in, act_out, has_ln, eps):
    """Single-K-block path: no accumulator scratch, no pl.when phases."""
    if has_ln:
        x_ref, w_ref, b_ref, g_ref, bt_ref, o_ref = refs
    else:
        x_ref, w_ref, b_ref, o_ref = refs

    x = x_ref[...]
    if has_ln:
        xf = x.astype(jnp.float32)
        mu = jnp.mean(xf, axis=-1, keepdims=True)
        xc = xf - mu
        var = jnp.mean(xc * xc, axis=-1, keepdims=True)
        x = (xc * jax.lax.rsqrt(var + eps) * g_ref[...] + bt_ref[...]
             ).astype(jnp.bfloat16)
    elif act_in == "silu":
        xf = x.astype(jnp.float32)
        x = (xf * jax.nn.sigmoid(xf)).astype(jnp.bfloat16)

    y = jnp.dot(x, w_ref[...], preferred_element_type=jnp.float32) + b_ref[...]
    if act_out == "silu":
        y = y * jax.nn.sigmoid(y)
    o_ref[...] = y.astype(o_ref.dtype)


def _matmul_acc_kernel(x_ref, w_ref, b_ref, o_ref, acc_ref, *, act_out):
    """K-tiled path with f32 VMEM accumulator (only used when K > _TK)."""
    @pl.when(pl.program_id(2) == 0)
    def _():
        acc_ref[...] = jnp.zeros_like(acc_ref)

    acc_ref[...] += jnp.dot(x_ref[...], w_ref[...],
                            preferred_element_type=jnp.float32)

    @pl.when(pl.program_id(2) == pl.num_programs(2) - 1)
    def _():
        y = acc_ref[...] + b_ref[...]
        if act_out == "silu":
            y = y * jax.nn.sigmoid(y)
        o_ref[...] = y.astype(o_ref.dtype)


def pallas_matmul(x, w, b, *, ln=None, act_in="none", act_out="none",
                  out_dtype=jnp.float32, eps=1e-5):
    """y = act_out( (ln|act_in)(x) @ w + b ).  bf16 MXU inputs, f32 accumulate."""
    M, K = x.shape
    Kw, N = w.shape
    assert K == Kw
    assert not (ln is not None and act_in != "none")

    Mp, tm = _pick(M, _TM, 16)
    Np, tn = _pick(N, _TN, 128)

    xb = _to_bf16(x)
    if Mp != M:
        xb = jnp.pad(xb, ((0, Mp - M), (0, 0)))
    wb = _to_bf16(w)
    bb = b.astype(jnp.float32).reshape(1, N)
    if Np != N:
        wb = jnp.pad(wb, ((0, 0), (0, Np - N)))
        bb = jnp.pad(bb, ((0, 0), (0, Np - N)))

    fuse_in = (ln is not None) or (act_in != "none")
    if fuse_in or K <= _TK:
        # Single-K path: full feature dim per block (also required by the
        # fused LayerNorm), no K padding, no scratch.
        gm, gn = Mp // tm, Np // tn
        in_specs = [pl.BlockSpec((tm, K), lambda i, j: (i, 0)),
                    pl.BlockSpec((K, tn), lambda i, j: (0, j)),
                    pl.BlockSpec((1, tn), lambda i, j: (0, j))]
        args = [xb, wb, bb]
        if ln is not None:
            g, beta = ln
            in_specs += [pl.BlockSpec((1, K), lambda i, j: (0, 0)),
                         pl.BlockSpec((1, K), lambda i, j: (0, 0))]
            args += [g.astype(jnp.float32).reshape(1, K),
                     beta.astype(jnp.float32).reshape(1, K)]
        out = pl.pallas_call(
            functools.partial(_matmul_direct_kernel, act_in=act_in,
                              act_out=act_out, has_ln=ln is not None, eps=eps),
            grid=(gm, gn),
            in_specs=in_specs,
            out_specs=pl.BlockSpec((tm, tn), lambda i, j: (i, j)),
            out_shape=jax.ShapeDtypeStruct((Mp, Np), out_dtype),
            compiler_params=pltpu.CompilerParams(
                dimension_semantics=("parallel", "parallel")),
        )(*args)
    else:
        Kp, tk = _round_up(K, _TK), _TK
        if Kp != K:
            xb = jnp.pad(xb, ((0, 0), (0, Kp - K)))
            wb = jnp.pad(wb, ((0, Kp - K), (0, 0)))
        gm, gn, gk = Mp // tm, Np // tn, Kp // tk
        out = pl.pallas_call(
            functools.partial(_matmul_acc_kernel, act_out=act_out),
            grid=(gm, gn, gk),
            in_specs=[pl.BlockSpec((tm, tk), lambda i, j, k: (i, k)),
                      pl.BlockSpec((tk, tn), lambda i, j, k: (k, j)),
                      pl.BlockSpec((1, tn), lambda i, j, k: (0, j))],
            out_specs=pl.BlockSpec((tm, tn), lambda i, j, k: (i, j)),
            out_shape=jax.ShapeDtypeStruct((Mp, Np), out_dtype),
            scratch_shapes=[pltpu.VMEM((tm, tn), jnp.float32)],
            compiler_params=pltpu.CompilerParams(
                dimension_semantics=("parallel", "parallel", "arbitrary")),
        )(xb, wb, bb)

    if (Mp, Np) != (M, N):
        out = out[:M, :N]
    return out


# ----------------------------------------------------------------------------
# Fused LayerNorm + GEGLU (value/gate kept as two weight matrices)
# ----------------------------------------------------------------------------

def _geglu_kernel(x_ref, wv_ref, wg_ref, bv_ref, bg_ref, g_ref, bt_ref, o_ref,
                  *, eps):
    xf = x_ref[...].astype(jnp.float32)
    mu = jnp.mean(xf, axis=-1, keepdims=True)
    xc = xf - mu
    var = jnp.mean(xc * xc, axis=-1, keepdims=True)
    xn = (xc * jax.lax.rsqrt(var + eps) * g_ref[...] + bt_ref[...]
          ).astype(jnp.bfloat16)
    val = jnp.dot(xn, wv_ref[...], preferred_element_type=jnp.float32) + bv_ref[...]
    gate = jnp.dot(xn, wg_ref[...], preferred_element_type=jnp.float32) + bg_ref[...]
    # TODO(synk): torch nn.GELU defaults to exact erf GELU; tanh approximation used here.
    o_ref[...] = (val * jax.nn.gelu(gate)).astype(o_ref.dtype)


def pallas_geglu(x, wv, wg, bv, bg, gamma, beta, eps=1e-5,
                 out_dtype=jnp.bfloat16):
    M, K = x.shape
    N = wv.shape[1]
    Mp, tm = _pick(M, _TM, 16)
    Np, tn = _pick(N, 256, 128)    # keep gn == 1 so the fused LN is computed once

    xb = _to_bf16(x)
    if Mp != M:
        xb = jnp.pad(xb, ((0, Mp - M), (0, 0)))
    wvb, wgb = _to_bf16(wv), _to_bf16(wg)
    bvb = bv.astype(jnp.float32).reshape(1, N)
    bgb = bg.astype(jnp.float32).reshape(1, N)
    if Np != N:
        wvb = jnp.pad(wvb, ((0, 0), (0, Np - N)))
        wgb = jnp.pad(wgb, ((0, 0), (0, Np - N)))
        bvb = jnp.pad(bvb, ((0, 0), (0, Np - N)))
        bgb = jnp.pad(bgb, ((0, 0), (0, Np - N)))

    out = pl.pallas_call(
        functools.partial(_geglu_kernel, eps=eps),
        grid=(Mp // tm, Np // tn),
        in_specs=[
            pl.BlockSpec((tm, K), lambda i, j: (i, 0)),
            pl.BlockSpec((K, tn), lambda i, j: (0, j)),
            pl.BlockSpec((K, tn), lambda i, j: (0, j)),
            pl.BlockSpec((1, tn), lambda i, j: (0, j)),
            pl.BlockSpec((1, tn), lambda i, j: (0, j)),
            pl.BlockSpec((1, K), lambda i, j: (0, 0)),
            pl.BlockSpec((1, K), lambda i, j: (0, 0)),
        ],
        out_specs=pl.BlockSpec((tm, tn), lambda i, j: (i, j)),
        out_shape=jax.ShapeDtypeStruct((Mp, Np), out_dtype),
        compiler_params=pltpu.CompilerParams(
            dimension_semantics=("parallel", "parallel")),
    )(xb, wvb, wgb, bvb, bgb,
      gamma.astype(jnp.float32).reshape(1, K),
      beta.astype(jnp.float32).reshape(1, K))
    if (Mp, Np) != (M, N):
        out = out[:M, :N]
    return out


# ----------------------------------------------------------------------------
# 3x3 stride-1 conv: in-kernel im2col, single K=9*cin matmul, fused bias/residual
# ----------------------------------------------------------------------------

def _conv3x3_kernel(*refs, Ho, Wo, has_pb, has_res):
    x_ref, w_ref, b_ref = refs[0], refs[1], refs[2]
    i = 3
    pb_ref = res_ref = None
    if has_pb:
        pb_ref = refs[i]; i += 1
    if has_res:
        res_ref = refs[i]; i += 1
    o_ref = refs[i]

    cin = x_ref.shape[-1]
    cout = o_ref.shape[-1]
    xblk = x_ref[0]                                       # (Ho+2, Wo+2, cin) bf16
    taps = []
    for t in range(9):
        dy, dx = divmod(t, 3)
        taps.append(xblk[dy:dy + Ho, dx:dx + Wo, :].reshape(Ho * Wo, cin))
    patch = jnp.concatenate(taps, axis=-1)                # (Ho*Wo, 9*cin)
    y = jnp.dot(patch, w_ref[...], preferred_element_type=jnp.float32) + b_ref[...]
    if has_pb:
        y = y + pb_ref[0]
    y = y.reshape(Ho, Wo, cout)
    if has_res:
        y = y + res_ref[0].astype(jnp.float32)
    o_ref[0] = y.astype(o_ref.dtype)


def conv3x3(x, p, pb=None, residual=None, out_dtype=jnp.float32):
    """3x3, stride 1, pad 1.  x: (N,H,W,Cin).  pb: optional (N,Cout) bias.
    residual: optional (N,H,W,Cout) tensor added to the conv output."""
    w, b = p["w"], p["b"]
    kh, kw, cin, cout = w.shape
    N, H, W, C = x.shape
    assert (kh, kw) == (3, 3) and C == cin
    xp = jnp.pad(_to_bf16(x), ((0, 0), (1, 1), (1, 1), (0, 0)))
    wr = _to_bf16(w).reshape(9 * cin, cout)
    br = b.astype(jnp.float32).reshape(1, cout)

    in_specs = [
        pl.BlockSpec((1, H + 2, W + 2, cin), lambda n: (n, 0, 0, 0)),
        pl.BlockSpec((9 * cin, cout), lambda n: (0, 0)),
        pl.BlockSpec((1, cout), lambda n: (0, 0)),
    ]
    args = [xp, wr, br]
    if pb is not None:
        in_specs.append(pl.BlockSpec((1, 1, cout), lambda n: (n, 0, 0)))
        args.append(pb.astype(jnp.float32).reshape(N, 1, cout))
    if residual is not None:
        in_specs.append(pl.BlockSpec((1, H, W, cout), lambda n: (n, 0, 0, 0)))
        args.append(residual)

    # TODO(synk): at production resolutions, tile the spatial dims (with a halo)
    # instead of one whole image per grid step and re-budget VMEM for v7x.
    return pl.pallas_call(
        functools.partial(_conv3x3_kernel, Ho=H, Wo=W,
                          has_pb=pb is not None, has_res=residual is not None),
        grid=(N,),
        in_specs=in_specs,
        out_specs=pl.BlockSpec((1, H, W, cout), lambda n: (n, 0, 0, 0)),
        out_shape=jax.ShapeDtypeStruct((N, H, W, cout), out_dtype),
        compiler_params=pltpu.CompilerParams(dimension_semantics=("parallel",)),
    )(*args)


def conv3x3_s2(x, p):
    """3x3, stride 2, pad 1 (Downsample): stride-1 conv subsampled at even pixels.
    Avoids the previous HBM im2col; the 4x extra MXU work on this single tiny
    layer is cheaper than the 9x-expanded patches round trip."""
    y = conv3x3(x, p)
    return y[:, ::2, ::2, :]


# ----------------------------------------------------------------------------
# 1x1 conv: NHWC kernel gridded over batch (no pad/slice round trips),
# optional fused residual add.
# ----------------------------------------------------------------------------

def _conv1x1_kernel(*refs, has_res):
    x_ref, w_ref, b_ref = refs[0], refs[1], refs[2]
    i = 3
    res_ref = None
    if has_res:
        res_ref = refs[i]; i += 1
    o_ref = refs[i]
    _, H, W, cin = x_ref.shape
    cout = o_ref.shape[-1]
    x = x_ref[0].reshape(H * W, cin)
    y = jnp.dot(x, w_ref[...], preferred_element_type=jnp.float32) + b_ref[...]
    y = y.reshape(H, W, cout)
    if has_res:
        y = y + res_ref[0].astype(jnp.float32)
    o_ref[0] = y.astype(o_ref.dtype)


def conv1x1(x, p, residual=None, out_dtype=jnp.float32):
    N, H, W, C = x.shape
    cout = p["w"].shape[-1]
    wr = _to_bf16(p["w"]).reshape(C, cout)
    br = p["b"].astype(jnp.float32).reshape(1, cout)
    in_specs = [
        pl.BlockSpec((1, H, W, C), lambda n: (n, 0, 0, 0)),
        pl.BlockSpec((C, cout), lambda n: (0, 0)),
        pl.BlockSpec((1, cout), lambda n: (0, 0)),
    ]
    args = [_to_bf16(x), wr, br]
    if residual is not None:
        in_specs.append(pl.BlockSpec((1, H, W, cout), lambda n: (n, 0, 0, 0)))
        args.append(residual)
    return pl.pallas_call(
        functools.partial(_conv1x1_kernel, has_res=residual is not None),
        grid=(N,),
        in_specs=in_specs,
        out_specs=pl.BlockSpec((1, H, W, cout), lambda n: (n, 0, 0, 0)),
        out_shape=jax.ShapeDtypeStruct((N, H, W, cout), out_dtype),
        compiler_params=pltpu.CompilerParams(dimension_semantics=("parallel",)),
    )(*args)


# ----------------------------------------------------------------------------
# GroupNorm (per-batch grid, two-pass variance, optional fused SiLU)
# ----------------------------------------------------------------------------

_GN_MASKS = {}


def _gn_masks(C, groups):
    key = (C, groups)
    if key not in _GN_MASKS:
        cg = C // groups
        m = (jnp.arange(C)[:, None] // cg ==
             jnp.arange(groups)[None, :]).astype(jnp.float32)
        _GN_MASKS[key] = (m, jnp.asarray(m.T))
    return _GN_MASKS[key]


def _groupnorm_kernel(x_ref, g_ref, b_ref, m_ref, mt_ref, o_ref, *, eps, cnt, silu):
    x = x_ref[0].astype(jnp.float32)                # (HW, C)
    m = m_ref[...]                                  # (C, G) indicator
    mt = mt_ref[...]                                # (G, C)
    s = jnp.sum(x, axis=0, keepdims=True)            # (1, C)
    gmean = jnp.dot(s, m, preferred_element_type=jnp.float32) / cnt       # (1, G)
    mean_c = jnp.dot(gmean, mt, preferred_element_type=jnp.float32)       # (1, C)
    xc = x - mean_c
    sq = jnp.sum(xc * xc, axis=0, keepdims=True)     # (1, C)
    gvar = jnp.dot(sq, m, preferred_element_type=jnp.float32) / cnt       # (1, G)
    inv_c = jnp.dot(jax.lax.rsqrt(gvar + eps), mt,
                    preferred_element_type=jnp.float32)                   # (1, C)
    y = xc * inv_c * g_ref[...] + b_ref[...]
    if silu:
        y = y * jax.nn.sigmoid(y)
    o_ref[0] = y.astype(o_ref.dtype)


def group_norm(x, p, groups=32, eps=1e-5, silu=False, out_dtype=jnp.float32):
    # TODO(synk): tile HW with running sums for production resolutions (v7x VMEM).
    N, H, W, C = x.shape
    HW = H * W
    xm = x.reshape(N, HW, C)
    mmat, mmat_t = _gn_masks(C, groups)
    out = pl.pallas_call(
        functools.partial(_groupnorm_kernel, eps=eps,
                          cnt=float(HW * (C // groups)), silu=silu),
        grid=(N,),
        in_specs=[
            pl.BlockSpec((1, HW, C), lambda n: (n, 0, 0)),
            pl.BlockSpec((1, C), lambda n: (0, 0)),
            pl.BlockSpec((1, C), lambda n: (0, 0)),
            pl.BlockSpec((C, groups), lambda n: (0, 0)),
            pl.BlockSpec((groups, C), lambda n: (0, 0)),
        ],
        out_specs=pl.BlockSpec((1, HW, C), lambda n: (n, 0, 0)),
        out_shape=jax.ShapeDtypeStruct((N, HW, C), out_dtype),
        compiler_params=pltpu.CompilerParams(dimension_semantics=("parallel",)),
    )(xm, p["g"].reshape(1, C), p["b"].reshape(1, C), mmat, mmat_t)
    return out.reshape(N, H, W, C)


# ----------------------------------------------------------------------------
# Attention: lane-dense (B, L, H*D) layout end-to-end, per-head 2-D matmuls,
# online softmax over KV tiles, scale folded into q.
# ----------------------------------------------------------------------------

def _attention_kernel(q_ref, kv_ref, o_ref, m_sc, l_sc, acc_sc, *,
                      H, D, scale, q_off, k_off, tkv, lk_real, masked):
    j = pl.program_id(1)
    C = H * D

    @pl.when(j == 0)
    def _():
        m_sc[...] = jnp.full(m_sc.shape, -jnp.inf, jnp.float32)
        l_sc[...] = jnp.zeros(l_sc.shape, jnp.float32)
        acc_sc[...] = jnp.zeros(acc_sc.shape, jnp.float32)

    q_all = q_ref[0]                                     # (Lq, Wq)  bf16
    kv = kv_ref[0]                                       # (tkv, Wkv) bf16
    q = (q_all[:, q_off:q_off + C].astype(jnp.float32) * scale
         ).astype(jnp.bfloat16)                          # scale folded once
    k = kv[:, k_off:k_off + C]
    v = kv[:, k_off + C:k_off + 2 * C]

    for h in range(H):
        q_h = q[:, h * D:(h + 1) * D]                    # (Lq, D)
        k_h = k[:, h * D:(h + 1) * D]                    # (Tk, D)
        v_h = v[:, h * D:(h + 1) * D]
        s = jax.lax.dot_general(q_h, k_h, (((1,), (1,)), ((), ())),
                                preferred_element_type=jnp.float32)  # (Lq, Tk)
        if masked:
            kpos = j * tkv + jax.lax.broadcasted_iota(jnp.int32, s.shape, 1)
            s = jnp.where(kpos < lk_real, s, -jnp.inf)

        m_prev = m_sc[h]                                 # (Lq, 1)
        m_new = jnp.maximum(m_prev, jnp.max(s, axis=-1, keepdims=True))
        alpha = jnp.exp(m_prev - m_new)
        p = jnp.exp(s - m_new)
        l_sc[h] = alpha * l_sc[h] + jnp.sum(p, axis=-1, keepdims=True)
        acc_sc[h] = alpha * acc_sc[h] + jnp.dot(
            p.astype(jnp.bfloat16), v_h, preferred_element_type=jnp.float32)
        m_sc[h] = m_new

    @pl.when(j == pl.num_programs(1) - 1)
    def _():
        outs = []
        for h in range(H):
            inv = pl.reciprocal(l_sc[h], approx=True)
            outs.append(acc_sc[h] * inv)
        o_ref[0] = jnp.concatenate(outs, axis=-1).astype(o_ref.dtype)


def pallas_attention(q_src, kv_src, *, heads, dh, q_off, k_off, scale,
                     out_dtype=jnp.bfloat16):
    """q_src: (B, Lq, Wq); kv_src: (B, Lk, Wkv).  Q columns start at q_off, the
    K and V column groups start at k_off / k_off+heads*dh.  Returns the
    head-merged (B, Lq, heads*dh) attention output (lane-dense)."""
    B, Lq, Wq = q_src.shape
    Lk, Wkv = kv_src.shape[1], kv_src.shape[2]
    C = heads * dh
    if Lk <= _TKV:
        tkv, Lkp = Lk, Lk
    else:
        tkv = _TKV
        Lkp = _round_up(Lk, _TKV)
        kv_src = jnp.pad(kv_src, ((0, 0), (0, Lkp - Lk), (0, 0)))
    nkv = Lkp // tkv
    return pl.pallas_call(
        functools.partial(_attention_kernel, H=heads, D=dh, scale=scale,
                          q_off=q_off, k_off=k_off, tkv=tkv, lk_real=Lk,
                          masked=(Lkp != Lk)),
        grid=(B, nkv),
        in_specs=[
            pl.BlockSpec((1, Lq, Wq), lambda b, j: (b, 0, 0)),
            pl.BlockSpec((1, tkv, Wkv), lambda b, j: (b, j, 0)),
        ],
        out_specs=pl.BlockSpec((1, Lq, C), lambda b, j: (b, 0, 0)),
        out_shape=jax.ShapeDtypeStruct((B, Lq, C), out_dtype),
        scratch_shapes=[pltpu.VMEM((heads, Lq, 1), jnp.float32),
                        pltpu.VMEM((heads, Lq, 1), jnp.float32),
                        pltpu.VMEM((heads, Lq, dh), jnp.float32)],
        compiler_params=pltpu.CompilerParams(
            dimension_semantics=("parallel", "arbitrary")),
    )(_to_bf16(q_src), _to_bf16(kv_src))


# ----------------------------------------------------------------------------
# Parameter construction (deterministic, synthetic)
# ----------------------------------------------------------------------------

class ParamFactory:
    def __init__(self, key):
        self.key = key

    def _take(self):
        self.key, sub = jax.random.split(self.key)
        return sub

    def linear(self, din, dout):
        return {
            "w": jax.random.normal(self._take(), (din, dout), jnp.float32) * 0.02,
            "b": jnp.zeros((dout,), jnp.float32),
        }

    def conv(self, kh, kw, cin, cout):
        return {
            "w": jax.random.normal(self._take(), (kh, kw, cin, cout), jnp.float32) * 0.05,
            "b": jnp.zeros((cout,), jnp.float32),
        }

    def norm(self, c):
        return {"g": jnp.ones((c,), jnp.float32), "b": jnp.zeros((c,), jnp.float32)}


def make_resblock(pf, ch, emb_dim, out_ch=None):
    out_ch = ch if out_ch is None else out_ch
    return {
        "kind": "res",
        "in_norm": pf.norm(ch),
        "in_conv": pf.conv(3, 3, ch, out_ch),
        "emb_lin": pf.linear(emb_dim, out_ch),
        "out_norm": pf.norm(out_ch),
        "out_conv": pf.conv(3, 3, out_ch, out_ch),   # zero_module in torch; random here
        "skip": None if ch == out_ch else pf.conv(1, 1, ch, out_ch),
    }


def make_crossattn(pf, qd, kd, vd, heads, dh):
    inner = heads * dh
    p = {
        "heads": heads, "dh": dh,
        "to_q": pf.linear(qd, inner),
        "to_k": pf.linear(kd, inner),
        "to_v": pf.linear(vd, inner),
        "to_out": pf.linear(inner, qd),
    }
    # fused projection weights precomputed at build time (no per-call concat).
    p["wkv"] = jnp.concatenate([p["to_k"]["w"], p["to_v"]["w"]], axis=1)
    p["bkv"] = jnp.concatenate([p["to_k"]["b"], p["to_v"]["b"]])
    if qd == kd == vd:
        p["wqkv"] = jnp.concatenate(
            [p["to_q"]["w"], p["to_k"]["w"], p["to_v"]["w"]], axis=1)
        p["bqkv"] = jnp.concatenate(
            [p["to_q"]["b"], p["to_k"]["b"], p["to_v"]["b"]])
    return p


def make_ff(pf, dim):
    inner = 4 * dim
    pv = pf.linear(dim, inner)
    pg = pf.linear(dim, inner)
    return {"wv": pv["w"], "wg": pg["w"], "bv": pv["b"], "bg": pg["b"],
            "out": pf.linear(inner, dim)}


def make_basic_block(pf, dim, kd, vd, heads, dh, objs_dim):
    return {
        "attn1": make_crossattn(pf, dim, dim, dim, heads, dh),
        "attn2": make_crossattn(pf, dim, kd, vd, heads, dh),
        "ff": make_ff(pf, dim),
        "norm1": pf.norm(dim), "norm2": pf.norm(dim), "norm3": pf.norm(dim),
        "fuser": {   # GatedSelfAttentionDense (fuser_type == 'gatedSA')
            "linear": pf.linear(objs_dim, dim),
            "attn": make_crossattn(pf, dim, dim, dim, heads, dh),
            "ff": make_ff(pf, dim),
            "norm1": pf.norm(dim), "norm2": pf.norm(dim),
            "alpha_attn": 0.1, "alpha_dense": 0.1,   # zero-init in torch; nonzero here
        },
    }


def make_spatial_transformer(pf, ch, kd, heads, dh, ctx_dim):
    return {
        "kind": "st",
        "norm": pf.norm(ch),                 # GroupNorm(32, ch, eps=1e-6)
        "proj_in": pf.conv(1, 1, ch, ch),
        "block": make_basic_block(pf, ch, kd, kd, heads, dh, ctx_dim),  # depth=1
        "proj_out": pf.conv(1, 1, ch, ch),   # zero_module in torch; random here
    }


def build_controlnet(cfg, key):
    pf = ParamFactory(key)
    mc = cfg["model_channels"]
    ted = 4 * mc
    heads = cfg["num_heads"]
    ctx = cfg["context_dim"]

    params = {"time_embed": [pf.linear(mc, ted), pf.linear(ted, ted)]}

    input_blocks = [[{"kind": "conv", **pf.conv(3, 3, cfg["in_channels"], mc)}]]
    zero_convs = [pf.conv(1, 1, mc, mc)]   # zero_module in torch; random here
    ch, ds = mc, 1
    for level, mult in enumerate(cfg["channel_mult"]):
        for _ in range(cfg["num_res_blocks"]):
            layers = [make_resblock(pf, ch, ted, mult * mc)]
            ch = mult * mc
            if ds in cfg["attention_resolutions"]:
                layers.append(make_spatial_transformer(pf, ch, ctx, heads, ch // heads, ctx))
            input_blocks.append(layers)
            zero_convs.append(pf.conv(1, 1, ch, ch))
        if level != len(cfg["channel_mult"]) - 1:
            input_blocks.append([{"kind": "down", "conv": pf.conv(3, 3, ch, ch)}])
            zero_convs.append(pf.conv(1, 1, ch, ch))
            ds *= 2

    middle = [
        make_resblock(pf, ch, ted),
        make_spatial_transformer(pf, ch, ctx, heads, ch // heads, ctx),
        make_resblock(pf, ch, ted),
    ]
    params.update(input_blocks=input_blocks, zero_convs=zero_convs,
                  middle=middle, middle_out=pf.conv(1, 1, ch, ch))
    return params


# ----------------------------------------------------------------------------
# Forward pass
# ----------------------------------------------------------------------------

def timestep_embedding(t, dim, max_period=10000):
    half = dim // 2
    freqs = jnp.exp(-math.log(max_period) * jnp.arange(half, dtype=jnp.float32) / half)
    args = t.astype(jnp.float32)[:, None] * freqs[None, :]
    return jnp.concatenate([jnp.cos(args), jnp.sin(args)], axis=-1)


def self_attention(x, p, ln):
    """LayerNorm fused into one QKV matmul -> flash attention -> out proj."""
    B, L, C = x.shape
    h, dh = p["heads"], p["dh"]
    inner = h * dh
    qkv = pallas_matmul(x.reshape(B * L, C), p["wqkv"], p["bqkv"], ln=ln,
                        out_dtype=jnp.bfloat16).reshape(B, L, 3 * inner)
    o = pallas_attention(qkv, qkv, heads=h, dh=dh, q_off=0, k_off=inner,
                         scale=dh ** -0.5)
    o = pallas_matmul(o.reshape(B * L, inner), p["to_out"]["w"], p["to_out"]["b"])
    return o.reshape(B, L, C)


def cross_attention(x, ctx, p, ln):
    """LayerNorm fused into the Q proj; ctx -> one fused KV matmul -> attention."""
    B, Lq, C = x.shape
    Lk, Ck = ctx.shape[1], ctx.shape[2]
    h, dh = p["heads"], p["dh"]
    inner = h * dh
    q = pallas_matmul(x.reshape(B * Lq, C), p["to_q"]["w"], p["to_q"]["b"], ln=ln,
                      out_dtype=jnp.bfloat16).reshape(B, Lq, inner)
    kv = pallas_matmul(ctx.reshape(B * Lk, Ck), p["wkv"], p["bkv"],
                       out_dtype=jnp.bfloat16).reshape(B, Lk, 2 * inner)
    o = pallas_attention(q, kv, heads=h, dh=dh, q_off=0, k_off=0, scale=dh ** -0.5)
    o = pallas_matmul(o.reshape(B * Lq, inner), p["to_out"]["w"], p["to_out"]["b"])
    return o.reshape(B, Lq, C)


def feed_forward(x2d, p_ff, p_ln):
    h = pallas_geglu(x2d, p_ff["wv"], p_ff["wg"], p_ff["bv"], p_ff["bg"],
                     p_ln["g"], p_ln["b"])
    # TODO(synk): the x + ff residual could be fused here once the residual
    # stream carries lane-aligned (128-padded) channel dims.
    return pallas_matmul(h, p_ff["out"]["w"], p_ff["out"]["b"])


def gated_self_attention(x, objs, p):
    B, L, C = x.shape
    No = objs.shape[1]
    o = pallas_matmul(objs.reshape(B * No, -1), p["linear"]["w"], p["linear"]["b"])
    o = o.reshape(B, No, C)
    cat = jnp.concatenate([x, o], axis=1)                       # (B, L+No, C)
    attn = self_attention(cat, p["attn"],
                          ln=(p["norm1"]["g"], p["norm1"]["b"]))[:, :L]
    x = x + jnp.tanh(p["alpha_attn"]) * attn                    # scale == 1
    ff = feed_forward(x.reshape(B * L, C), p["ff"], p["norm2"]).reshape(B, L, C)
    x = x + jnp.tanh(p["alpha_dense"]) * ff
    return x


def basic_transformer_block(x, ctx, objs, p):
    B, L, C = x.shape
    x = x + self_attention(x, p["attn1"], ln=(p["norm1"]["g"], p["norm1"]["b"]))
    x = gated_self_attention(x, objs, p["fuser"])
    x = x + cross_attention(x, ctx, p["attn2"], ln=(p["norm2"]["g"], p["norm2"]["b"]))
    x = x + feed_forward(x.reshape(B * L, C), p["ff"], p["norm3"]).reshape(B, L, C)
    return x


def spatial_transformer(x, ctx, objs, p):
    B, H, W, C = x.shape
    x_in = x
    h = group_norm(x, p["norm"], groups=32, eps=1e-6, silu=False,
                   out_dtype=jnp.bfloat16)
    h = conv1x1(h, p["proj_in"])
    h = h.reshape(B, H * W, C)
    h = basic_transformer_block(h, ctx, objs, p["block"])
    h = h.reshape(B, H, W, C)
    return conv1x1(h, p["proj_out"], residual=x_in)   # h + x_in fused in-kernel


def resblock(x, emb, p):
    h = group_norm(x, p["in_norm"], groups=32, eps=1e-5, silu=True,
                   out_dtype=jnp.bfloat16)
    emb_out = pallas_matmul(emb, p["emb_lin"]["w"], p["emb_lin"]["b"], act_in="silu")
    h = conv3x3(h, p["in_conv"], pb=emb_out, out_dtype=jnp.bfloat16)  # emb bias fused
    h = group_norm(h, p["out_norm"], groups=32, eps=1e-5, silu=True,
                   out_dtype=jnp.bfloat16)
    # dropout == 0 -> identity
    if p["skip"] is None:
        return conv3x3(h, p["out_conv"], residual=x)          # skip add fused
    out = conv3x3(h, p["out_conv"])
    return conv1x1(x, p["skip"], residual=out)                 # skip conv + add fused


def apply_layer(layer, h, emb, context, objs):
    kind = layer["kind"]
    if kind == "conv":
        return conv3x3(h, layer)
    if kind == "res":
        return resblock(h, emb, layer)
    if kind == "st":
        return spatial_transformer(h, context, objs, layer)
    if kind == "down":
        return conv3x3_s2(h, layer["conv"])
    raise ValueError(kind)


def controlnet_forward(params, cfg, x, timesteps, context, objs):
    # time embedding: linear -> SiLU -> linear
    t_emb = timestep_embedding(timesteps, cfg["model_channels"])
    e = pallas_matmul(t_emb, params["time_embed"][0]["w"], params["time_embed"][0]["b"],
                      act_out="silu")
    emb = pallas_matmul(e, params["time_embed"][1]["w"], params["time_embed"][1]["b"])

    h = x
    hs = []
    for block, zc in zip(params["input_blocks"], params["zero_convs"]):
        for layer in block:
            h = apply_layer(layer, h, emb, context, objs)
        hs.append(conv1x1(h, zc))
    for layer in params["middle"]:
        h = apply_layer(layer, h, emb, context, objs)
    hs.append(conv1x1(h, params["middle_out"]))
    return hs


# ----------------------------------------------------------------------------
# Main
# ----------------------------------------------------------------------------

if __name__ == "__main__":
    cfg = dict(
        image_size=16, in_channels=4, model_channels=32, out_channels=4,
        num_res_blocks=1, attention_resolutions=(2,), channel_mult=(1, 2),
        num_heads=4, context_dim=16, fuser_type="gatedSA",
    )
    key = jax.random.PRNGKey(0)
    kx, kc, ko, kp = jax.random.split(key, 4)
    params = build_controlnet(cfg, kp)

    B = 2
    x_nchw = jax.random.normal(kx, (B, cfg["in_channels"], 16, 16), jnp.float32)
    timesteps = jnp.array([10.0, 500.0], jnp.float32)
    context = jax.random.normal(kc, (B, 8, cfg["context_dim"]), jnp.float32)
    objs = jax.random.normal(ko, (B, 4, cfg["context_dim"]), jnp.float32)

    # layout: convert NCHW (PyTorch convention) -> NHWC for the kernels.
    x = jnp.transpose(x_nchw, (0, 2, 3, 1))
    hs = controlnet_forward(params, cfg, x, timesteps, context, objs)
    hs = [jnp.transpose(h, (0, 3, 1, 2)) for h in hs]   # back to NCHW
    hs = jax.block_until_ready(hs)

    expected_shapes = [(2, 32, 16, 16), (2, 32, 16, 16), (2, 32, 8, 8),
                       (2, 64, 8, 8), (2, 64, 8, 8)]
    assert [tuple(h.shape) for h in hs] == expected_shapes
    assert all(bool(jnp.all(jnp.isfinite(h))) for h in hs)
    print("KERNEL_OK")
</pallas_src>

<mosaic_0001>
module attributes {stable_mosaic.version = 11 : i64} {
  func.func @_matmul_direct_kernel(%arg0: i32, %arg1: i32, %arg2: memref<16x32xbf16, #tpu.memory_space<vmem>>, %arg3: memref<32x128xbf16, #tpu.memory_space<vmem>>, %arg4: memref<1x128xf32, #tpu.memory_space<vmem>>, %arg5: memref<16x128xf32, #tpu.memory_space<vmem>>) attributes {dimension_semantics = [#tpu.dimension_semantics<parallel>, #tpu.dimension_semantics<parallel>], iteration_bounds = array<i64: 1, 1>, scalar_prefetch = 0 : i64, scratch_operands = 0 : i64, tpu.core_type = #tpu.core_type<tc>, window_params = [{transform_indices = @transform_0, window_bounds = array<i64: 16, 32>}, {transform_indices = @transform_1, window_bounds = array<i64: 32, 128>}, {transform_indices = @transform_2, window_bounds = array<i64: 1, 128>}, {transform_indices = @transform_3, window_bounds = array<i64: 16, 128>}]} {
    %c0 = arith.constant 0 : index
    %c0_0 = arith.constant 0 : index
    %0 = vector.load %arg2[%c0, %c0_0] : memref<16x32xbf16, #tpu.memory_space<vmem>>, vector<16x32xbf16>
    %c0_1 = arith.constant 0 : index
    %c0_2 = arith.constant 0 : index
    %1 = vector.load %arg3[%c0_1, %c0_2] : memref<32x128xbf16, #tpu.memory_space<vmem>>, vector<32x128xbf16>
    %cst = arith.constant dense<0.000000e+00> : vector<16x128xf32>
    %2 = tpu.matmul %0, %1, %cst {dimension_numbers = #tpu.dot_dimension_numbers<[1], [0], [0], [1], [0, 0, 1, 1], [], []>} : vector<16x32xbf16>, vector<32x128xbf16>, vector<16x128xf32> -> vector<16x128xf32>
    %c0_3 = arith.constant 0 : index
    %c0_4 = arith.constant 0 : index
    %3 = vector.load %arg4[%c0_3, %c0_4] : memref<1x128xf32, #tpu.memory_space<vmem>>, vector<1x128xf32>
    %4 = vector.broadcast %3 : vector<1x128xf32> to vector<16x128xf32>
    %5 = arith.addf %2, %4 : vector<16x128xf32>
    %6 = arith.negf %5 : vector<16x128xf32>
    %7 = math.exp %6 : vector<16x128xf32>
    %cst_5 = arith.constant 1.000000e+00 : f32
    %8 = vector.broadcast %cst_5 : f32 to vector<16x128xf32>
    %9 = arith.addf %8, %7 : vector<16x128xf32>
    %10 = arith.divf %8, %9 : vector<16x128xf32>
    %11 = arith.mulf %5, %10 : vector<16x128xf32>
    %c0_6 = arith.constant 0 : index
    %c0_7 = arith.constant 0 : index
    %12 = vector.load %arg5[%c0_6, %c0_7] : memref<16x128xf32, #tpu.memory_space<vmem>>, vector<16x128xf32>
    tpu.vector_store %arg5[%c0_6, %c0_7], %11 {strides = array<i32>} : memref<16x128xf32, #tpu.memory_space<vmem>>, vector<16x128xf32>,
    return
  }
  func.func @transform_0(%arg0: i32, %arg1: i32) -> (i32, i32) {
    %c0_i32 = arith.constant 0 : i32
    %c0_i32_0 = arith.constant 0 : i32
    return %arg0, %c0_i32 : i32, i32
  }
  func.func @transform_1(%arg0: i32, %arg1: i32) -> (i32, i32) {
    %c0_i32 = arith.constant 0 : i32
    %c0_i32_0 = arith.constant 0 : i32
    return %c0_i32, %arg1 : i32, i32
  }
  func.func @transform_2(%arg0: i32, %arg1: i32) -> (i32, i32) {
    %c0_i32 = arith.constant 0 : i32
    %c0_i32_0 = arith.constant 0 : i32
    return %c0_i32, %arg1 : i32, i32
  }
  func.func @transform_3(%arg0: i32, %arg1: i32) -> (i32, i32) {
    %c0_i32 = arith.constant 0 : i32
    return %arg0, %arg1 : i32, i32
  }
}

</mosaic_0001>

<bundles_post_ra>
// kernel: tpu_custom_call.1
= control target key start
LH: loop header
LB: loop body
LE: loop exit
PB: predicated region body
PF: predicated region fallthrough
CT: control target
= control target key end

     0   :  { %8 = vsyncpa [#allocation3], 0  ;;  %s331_s0 = inlined_call_operand.hbm [shape: bf16[16,32], index: 0, kind: input, shape index: {}]   ;;  %s332_s1 = inlined_call_operand.hbm [shape: bf16[32,128], index: 1, kind: input, shape index: {}]   ;;  %s333_s2 = inlined_call_operand.vmem [shape: f32[1,128], index: 2, kind: input, shape index: {}]   ;;  %s334_s3 = inlined_call_operand.hbm [shape: f32[16,128], index: 3, kind: output, shape index: {}]  }
   0x1   :  { %9 = vsyncpa [#allocation6], 0 }
   0x2   :  { %10 = vsyncpa [#allocation4], 0  ;;  %s263_s12 = smov [#allocation2]   ;;  %s191_s16 = scalar_lea.hbm %s331_s0, 128 }
   0x3   :  { %s16_s13 = sshll.u32 %s263_s12, 4  ;;  %p192_p0 = scmp.ne.s32.totalorder %s331_s0, %s191_s16  ;;  %s17_s13 = int_to_ptr.vmem [resolvable:$true] %s16_s13 }
   0x4   :  { %p195_p1 = scmp.lt.u32.totalorder %s191_s16, %s331_s0 }
   0x6   :  { %p197_p2 = pnand %p195_p1, %p192_p0 }
   0x8   :  { %200 = shalt.err (!%p197_p2)
}
   0x9   :  { %s201_s21 = scalar_lea.vmem %s17_s13, 128  ;;  %p206_p4 = scmp.lt.s32.totalorder %s17_s13, %s17_s13 }
   0xa   :  { %p202_p3 = scmp.ne.s32.totalorder %s17_s13, %s201_s21  ;;  %p207_p5 = scmp.lt.s32.totalorder %s201_s21, %s201_s21 }
   0xc   :  { %p208_p6 = por %p207_p5, %p206_p4 }
   0xe   :  { %p209_p7 = pnand %p208_p6, %p202_p3 }
  0x10   :  { %212 = shalt.err (!%p209_p7)
}
  0x11   :  { %s264_s22 = smov 64   ;;  %s265_s23 = smov 4  }
  0x12   :  { %22 = dma.hbm_to_vmem [thread:$0]  %s331_s0, 128, %s17_s13, [#allocation3], %s264_s22, %s264_s22, %s265_s23  }
  0x13   :  { %s266_s26 = smov [#allocation5]   ;;  %s213_s30 = scalar_lea.hbm %s332_s1, 256 }
  0x14   :  { %s28_s27 = sshll.u32 %s266_s26, 4  ;;  %p214_p8 = scmp.ne.s32.totalorder %s332_s1, %s213_s30  ;;  %s29_s27 = int_to_ptr.vmem [resolvable:$true] %s28_s27 }
  0x15   :  { %p217_p9 = scmp.lt.u32.totalorder %s213_s30, %s332_s1 }
  0x17   :  { %p219_p10 = pnand %p217_p9, %p214_p8 }
  0x19   :  { %222 = shalt.err (!%p219_p10)
}
  0x1a   :  { %s223_s8 = scalar_lea.vmem %s29_s27, 256  ;;  %p228_p12 = scmp.lt.s32.totalorder %s29_s27, %s29_s27 }
  0x1b   :  { %p224_p11 = scmp.ne.s32.totalorder %s29_s27, %s223_s8  ;;  %p229_p13 = scmp.lt.s32.totalorder %s223_s8, %s223_s8 }
  0x1d   :  { %p230_p0 = por %p229_p13, %p228_p12 }
  0x1f   :  { %p231_p1 = pnand %p230_p0, %p224_p11 }
  0x21   :  { %234 = shalt.err (!%p231_p1)
}
  0x22   :  { %34 = dma.hbm_to_vmem [thread:$0]  %s332_s1, 256, %s29_s27, [#allocation6], %s264_s22, %s264_s22, %s265_s23  }
  0x23   :  { %257 = dma.done.wait [#allocation3], 128  }
  0x24   :  { %258 = vsyncadd [#allocation3], 4294967168 }
  0x25   :  { %259 = dma.done.wait [#allocation6], 256  }
  0x26   :  { %260 = vsyncadd [#allocation6], 4294967040  ;;  %v267_v0 = vmov 0.0   ;;  %vm268_vm0 = vmmov 0   ;;  %v180_v1 = vld [vmem:[#allocation5] sm:$0xff]   ;;  %v181_v2 = vld [vmem:[#allocation5 + $0x8] sm:$0xff]  }
  0x27   :  { %163 = vmatprep.subr.bf16.mxu0 %v267_v0  ;;  %167 = vmatprep.mubr.msk.bf16.mxu0 %vm268_vm0, %v267_v0  ;;  %v182_v3 = vld [vmem:[#allocation2] sm:$0xff]   ;;  %vm74_vm1 = vcmask 261120   ;;  %s269_s1 = smov [#allocation7]  }
  0x28   :  { %164 = vmatpush3.bf16.msra.mxu0 %v180_v1  ;;  %v153_v4 = vld [vmem:[%s333_s2] ss:$0 sm:$0xff]  ;;  %s140_s12 = sshll.u32 %s269_s1, 4  ;;  %s141_s12 = int_to_ptr.vmem [resolvable:$true] %s140_s12 }
  0x29   :  { %165 = vmatprep.subr.bf16.mxu0 %v267_v0  ;;  %s235_s2 = scalar_lea.vmem %s141_s12, 256  ;;  %p240_p3 = scmp.lt.s32.totalorder %s141_s12, %s141_s12 }
  0x2a   :  { %p236_p2 = scmp.ne.s32.totalorder %s141_s12, %s235_s2  ;;  %p241_p4 = scmp.lt.s32.totalorder %s235_s2, %s235_s2 }
  0x2c   :  { %166 = vmatpush3.bf16.msra.mxu0 %v181_v2  ;;  %p242_p5 = por %p241_p4, %p240_p3 }
  0x2e   :  { %p243_p6 = pnand %p242_p5, %p236_p2 }
  0x2f   :  { %168 = vmatmul.mubr.msk.bf16.vlgmr.msra.gmra.mrb[0].mxu0 %vm74_vm1, %v182_v3 }
 0x102   :  { %v112_v5 = vpop.f32.mrb[0].mxu0 }
 0x103   :  { %v113_v6 = vadd.f32 %v153_v4, %v112_v5  ;;  %v169_v7 = vpop.f32.mrb[1].mxu0 }
 0x104   :  { %v115_v8 = vpop.f32.mrb[2].mxu0 }
 0x105   :  { %v158_v9 = vmul.f32 -1.442695, %v113_v6  ;;  %v116_v10 = vadd.f32 %v153_v4, %v115_v8  ;;  %v170_v11 = vpop.f32.mrb[3].mxu0 }
 0x107   :  { %183 = vpow2.f32 %v158_v9  ;;  %v159_v12 = vmul.f32 -1.442695, %v116_v10 }
 0x109   :  { %185 = vpow2.f32 %v159_v12 }
 0x111   :  { %v184_v13 = vpop.eup %183 }
 0x112   :  { %v125_v14 = vadd.f32 1.0, %v184_v13 }
 0x113   :  { %v186_v15 = vpop.eup %185 }
 0x114   :  { %187 = vrcp.f32 %v125_v14  ;;  %v126_v16 = vadd.f32 1.0, %v186_v15 }
 0x116   :  { %189 = vrcp.f32 %v126_v16 }
 0x11e   :  { %v188_v17 = vpop.eup %187 }
 0x11f   :  { %v131_v18 = vmul.f32 %v188_v17, %v113_v6 }
 0x120   :  { %v190_v19 = vpop.eup %189 }
 0x121   :  { %133 = vst [vmem:[#allocation7] sm:$0xff] %v131_v18  ;;  %v132_v20 = vmul.f32 %v190_v19, %v116_v10 }
 0x123   :  { %134 = vst [vmem:[#allocation7 + $0x8] sm:$0xff] %v132_v20 }
 0x124   :  { %246 = shalt.err (!%p243_p6)
}
 0x125   :  { %s247_s15 = scalar_lea.hbm %s334_s3, 256 }
 0x126   :  { %p248_p7 = scmp.ne.s32.totalorder %s334_s3, %s247_s15  ;;  %p251_p8 = scmp.lt.u32.totalorder %s247_s15, %s334_s3 }
 0x128   :  { %p253_p9 = pnand %p251_p8, %p248_p7 }
 0x12a   :  { %256 = shalt.err (!%p253_p9)
}
 0x12b   :  { %s270_s20 = smov 128   ;;  %s271_s21 = smov 8  }
 0x12c   :  { %146 = dma.vmem_to_hbm [thread:$0]  %s141_s12, 256, %s334_s3, [#allocation4], %s270_s20, %s270_s20, %s271_s21  }
 0x12d   :  { %261 = dma.done.wait [#allocation4], 256  }
 0x12e   :  { %262 = vsyncadd [#allocation4], 4294967040 }
 0x12f   :  { %150 = vsyncpa [#allocation3], 1 }
 0x130   :  { %151 = vsyncpa [#allocation6], 1 }
 0x131   :  { %152 = vsyncpa [#allocation4], 1 }

</bundles_post_ra>
